<compile_context>
chip_gen: v5e
topology: v5e:2x2
jax: 0.10.0
libtpu: 0.0.40
codegen_flags: <defaults>
</compile_context>

<pallas_src>
import functools

import jax
import jax.numpy as jnp
from jax import lax
from jax.experimental import pallas as pl
from jax.experimental.pallas import tpu as pltpu

LANES = 128
SLAB_ROWS = 512                        # per-slab temporaries ~256 KiB (f32)
TARGET_BLOCK_BYTES = 2 * 1024 * 1024   # per-input DMA block (4096 f32 rows / 8192 bf16)


def _sublane_multiple(dtype):
    # (8,128) tiling for 32-bit, (16,128) for bf16, (32,128) for 8-bit dtypes.
    itemsize = jnp.dtype(dtype).itemsize
    return 8 * max(1, 4 // itemsize)


def _tensorcores_per_chip():
    # v7x has 2 TensorCores per Pallas kernel; v5e/v6e have 1.  Detect conservatively:
    # anything not positively identified as v7x gets a single chunk (no-op split).
    try:
        kind = jax.local_devices()[0].device_kind.lower()
    except Exception:
        return 1
    if "v7" in kind or "7x" in kind:
        return 2
    return 1


def _bce_loss_elements(x, y, pos_weight):
    # PyTorch-stable BCEWithLogitsLoss with pos_weight:
    #   log_weight = 1 + (pos_weight - 1) * y
    #   loss = (1 - y) * x + log_weight * (log1p(exp(-|x|)) + max(-x, 0))
    x = x.astype(jnp.float32)
    y = y.astype(jnp.float32)
    log_weight = 1.0 + (pos_weight - 1.0) * y
    return (1.0 - y) * x + log_weight * (
        jnp.log1p(jnp.exp(-jnp.abs(x))) + jnp.maximum(-x, 0.0))


def _bce_logits_kernel(pos_weight, valid_rows, tile_rows, slab_rows,
                       tiles_per_chunk, ypred_ref, ytgt_ref, out_ref):
    c = pl.program_id(0)
    t = pl.program_id(1)

    @pl.when(t == 0)
    def _():
        out_ref[...] = jnp.zeros_like(out_ref)

    tile_base = (c * tiles_per_chunk + t) * tile_rows
    n_slabs = tile_rows // slab_rows

    def slab_body(i, acc):
        start = pl.multiple_of(i * slab_rows, slab_rows)
        x = ypred_ref[pl.ds(start, slab_rows), :].astype(jnp.float32)
        y = ytgt_ref[pl.ds(start, slab_rows), :].astype(jnp.float32)

        log_weight = 1.0 + (pos_weight - 1.0) * y
        loss = (1.0 - y) * x + log_weight * (
            jnp.log1p(jnp.exp(-jnp.abs(x))) + jnp.maximum(-x, 0.0))

        # Mask rows that fall beyond the real array (ragged last tile); the masked
        # region may contain arbitrary stale VMEM data, so select-with-where (robust
        # even against NaN/Inf garbage), never multiply by a mask.
        row = lax.broadcasted_iota(jnp.int32, (slab_rows, LANES), 0)
        loss = jnp.where(tile_base + start + row < valid_rows, loss, 0.0)

        # (slab_rows,128)->(slab_rows//8,8,128) is layout-free; summing the leading
        # axis is pure vreg-wise VPU adds (no per-step XLU reduce).
        return acc + loss.reshape(slab_rows // 8, 8, LANES).sum(axis=0)

    acc = lax.fori_loop(0, n_slabs, slab_body,
                        jnp.zeros((8, LANES), jnp.float32), unroll=True)
    # Output block index ignores t -> the block stays resident in VMEM across the
    # reduction axis and acts as the accumulator; single HBM writeback at the end.
    out_ref[0] += acc


def simple_loss(ypred, ytgt, pos_weight):
    """BCEWithLogitsLoss(pos_weight)(ypred, ytgt), mean reduction, returns scalar f32."""
    assert ypred.shape == ytgt.shape
    total = int(ypred.size)
    assert total > 0
    pos_weight = float(pos_weight)

    yp_flat = ypred.reshape(-1)
    yt_flat = ytgt.reshape(-1)

    rows = total // LANES                 # full 128-wide rows
    mult = max(_sublane_multiple(ypred.dtype), _sublane_multiple(ytgt.dtype))

    loss_sum = jnp.float32(0.0)
    kernel_elems = 0

    if rows >= mult:
        kernel_elems = rows * LANES
        # Free (no-copy) reshape when total is 128-aligned; otherwise only the
        # 128-aligned bulk is fed to the kernel and the <128-element tail is summed
        # in plain XLA below.  No concatenate / padding copies of the inputs.
        yp2 = yp_flat[:kernel_elems].reshape(rows, LANES)
        yt2 = yt_flat[:kernel_elems].reshape(rows, LANES)

        itemsize = max(jnp.dtype(ypred.dtype).itemsize,
                       jnp.dtype(ytgt.dtype).itemsize)
        target_rows = max(mult, TARGET_BLOCK_BYTES // (LANES * itemsize))

        # slab_rows: a sublane-multiple <= 512 rows; tile_rows: a multiple of slab_rows
        # close to the byte-budget target (never padded up beyond one ragged tile).
        slab_rows = min(SLAB_ROWS, target_rows, pl.cdiv(rows, mult) * mult)
        slab_rows = max(mult, (slab_rows // mult) * mult)
        tile_rows = min(target_rows, pl.cdiv(rows, slab_rows) * slab_rows)
        tile_rows = max(slab_rows, (tile_rows // slab_rows) * slab_rows)

        total_tiles = pl.cdiv(rows, tile_rows)
        nchunks = min(_tensorcores_per_chip(), total_tiles)
        tiles_per_chunk = pl.cdiv(total_tiles, nchunks)

        kernel = functools.partial(_bce_logits_kernel, pos_weight, rows,
                                   tile_rows, slab_rows, tiles_per_chunk)

        in_map = lambda c, t: (c * tiles_per_chunk + t, 0)

        if nchunks > 1:
            # Explicit TensorCore split (only real on v7x; string "parallel" does not
            # shard across cores there).
            dim_sem = (pltpu.CORE_PARALLEL, pltpu.ARBITRARY)
        else:
            dim_sem = (pltpu.ARBITRARY, pltpu.ARBITRARY)

        cost = pl.CostEstimate(
            flops=10 * kernel_elems,
            transcendentals=2 * kernel_elems,
            bytes_accessed=kernel_elems * (jnp.dtype(ypred.dtype).itemsize
                                           + jnp.dtype(ytgt.dtype).itemsize)
            + nchunks * 8 * LANES * 4,
        )

        partial_sums = pl.pallas_call(
            kernel,
            out_shape=jax.ShapeDtypeStruct((nchunks, 8, LANES), jnp.float32),
            grid_spec=pltpu.PrefetchScalarGridSpec(
                num_scalar_prefetch=0,
                grid=(nchunks, tiles_per_chunk),
                in_specs=[
                    pl.BlockSpec((tile_rows, LANES), in_map),  # ypred tile
                    pl.BlockSpec((tile_rows, LANES), in_map),  # ytgt tile
                ],
                out_specs=pl.BlockSpec((1, 8, LANES), lambda c, t: (c, 0, 0)),
            ),
            compiler_params=pltpu.CompilerParams(
                dimension_semantics=dim_sem,
                vmem_limit_bytes=32 * 1024 * 1024,
            ),
            cost_estimate=cost,
        )(yp2, yt2)

        loss_sum = jnp.sum(partial_sums)

    # Ragged <128-element tail (or the whole input if it is tiny): plain XLA.
    if kernel_elems < total:
        loss_sum = loss_sum + jnp.sum(
            _bce_loss_elements(yp_flat[kernel_elems:], yt_flat[kernel_elems:],
                               pos_weight))

    return loss_sum / jnp.float32(total)


def _reference(ypred, ytgt, pos_weight):
    return jnp.mean(_bce_loss_elements(ypred, ytgt, float(pos_weight)))


if __name__ == "__main__":
    key = jax.random.PRNGKey(0)
    k1, k2, k3, k4 = jax.random.split(key, 4)
    pos_weight = 2.13  # the pos_weight scalar from SimpleLoss.__init__

    # Test 1: segmentation-style logit map (B, C, H, W); 128-aligned element count,
    # so the kernel sees the whole input with zero wrapper-side copies.
    B, C, H, W = 2, 4, 16, 16
    ypred = jax.random.normal(k1, (B, C, H, W), dtype=jnp.float32) * 3.0
    ytgt = (jax.random.uniform(k2, (B, C, H, W)) > 0.5).astype(jnp.float32)
    loss = jax.block_until_ready(simple_loss(ypred, ytgt, pos_weight))
    ref = _reference(ypred, ytgt, pos_weight)
    assert jnp.allclose(loss, ref, rtol=1e-5, atol=1e-5), (loss, ref)

    # Test 2: non-128-aligned element count (2*5*109 = 1090 -> 8 full rows through the
    # kernel + a 66-element tail summed in XLA).
    ypred2 = jax.random.normal(k3, (2, 5, 109), dtype=jnp.float32) * 3.0
    ytgt2 = (jax.random.uniform(k4, (2, 5, 109)) > 0.5).astype(jnp.float32)
    loss2 = jax.block_until_ready(simple_loss(ypred2, ytgt2, pos_weight))
    ref2 = _reference(ypred2, ytgt2, pos_weight)
    assert jnp.allclose(loss2, ref2, rtol=1e-5, atol=1e-5), (loss2, ref2)

    print("KERNEL_OK")
</pallas_src>

<mosaic_0001>
module attributes {stable_mosaic.version = 11 : i64} {
  func.func @_bce_logits_kernel(%arg0: i32, %arg1: i32, %arg2: memref<16x128xf32, #tpu.memory_space<vmem>>, %arg3: memref<16x128xf32, #tpu.memory_space<vmem>>, %arg4: memref<1x8x128xf32, #tpu.memory_space<vmem>>) attributes {dimension_semantics = [#tpu.dimension_semantics<arbitrary>, #tpu.dimension_semantics<arbitrary>], iteration_bounds = array<i64: 1, 1>, scalar_prefetch = 0 : i64, scratch_operands = 0 : i64, tpu.core_type = #tpu.core_type<tc>, window_params = [{transform_indices = @transform_0, window_bounds = array<i64: 16, 128>}, {transform_indices = @transform_1, window_bounds = array<i64: 16, 128>}, {transform_indices = @transform_2, window_bounds = array<i64: 1, 8, 128>}]} {
    %c0_i32 = arith.constant 0 : i32
    %0 = arith.cmpi eq, %arg1, %c0_i32 : i32
    %1 = arith.extui %0 : i1 to i32
    %c0_i32_0 = arith.constant 0 : i32
    %2 = arith.cmpi ne, %1, %c0_i32_0 : i32
    scf.if %2 {
      %cst_20 = arith.constant 0.000000e+00 : f32
      %49 = vector.broadcast %cst_20 : f32 to vector<1x8x128xf32>
      %c0_21 = arith.constant 0 : index
      %c0_22 = arith.constant 0 : index
      %c0_23 = arith.constant 0 : index
      %50 = vector.load %arg4[%c0_21, %c0_22, %c0_23] : memref<1x8x128xf32, #tpu.memory_space<vmem>>, vector<1x8x128xf32>
      tpu.vector_store %arg4[%c0_21, %c0_22, %c0_23], %49 {strides = array<i32>} : memref<1x8x128xf32, #tpu.memory_space<vmem>>, vector<1x8x128xf32>,
    } else {
    }
    %c1_i32 = arith.constant 1 : i32
    %3 = arith.muli %arg0, %c1_i32 : i32
    %4 = arith.addi %3, %arg1 : i32
    %c16_i32 = arith.constant 16 : i32
    %5 = arith.muli %4, %c16_i32 : i32
    %cst = arith.constant 0.000000e+00 : f32
    %6 = vector.broadcast %cst : f32 to vector<8x128xf32>
    %c0_i32_1 = arith.constant 0 : i32
    %c16_i32_2 = arith.constant 16 : i32
    %7 = arith.muli %c0_i32_1, %c16_i32_2 : i32
    %8 = tpu.assume_multiple %7, 16 : i32
    %9 = arith.index_cast %8 : i32 to index
    %c0 = arith.constant 0 : index
    %10 = vector.load %arg2[%9, %c0] : memref<16x128xf32, #tpu.memory_space<vmem>>, vector<16x128xf32>
    %11 = arith.index_cast %8 : i32 to index
    %c0_3 = arith.constant 0 : index
    %12 = vector.load %arg3[%11, %c0_3] : memref<16x128xf32, #tpu.memory_space<vmem>>, vector<16x128xf32>
    %cst_4 = arith.constant 1.130000e+00 : f32
    %13 = vector.broadcast %cst_4 : f32 to vector<16x128xf32>
    %14 = arith.mulf %13, %12 : vector<16x128xf32>
    %cst_5 = arith.constant 1.000000e+00 : f32
    %15 = vector.broadcast %cst_5 : f32 to vector<16x128xf32>
    %16 = arith.addf %15, %14 : vector<16x128xf32>
    %cst_6 = arith.constant 1.000000e+00 : f32
    %17 = vector.broadcast %cst_6 : f32 to vector<16x128xf32>
    %18 = arith.subf %17, %12 : vector<16x128xf32>
    %19 = arith.mulf %18, %10 : vector<16x128xf32>
    %20 = math.absf %10 : vector<16x128xf32>
    %cst_7 = arith.constant 0.000000e+00 : f32
    %21 = vector.broadcast %cst_7 : f32 to vector<16x128xf32>
    %22 = arith.subf %21, %20 : vector<16x128xf32>
    %23 = math.exp %22 : vector<16x128xf32>
    %24 = math.log1p %23 : vector<16x128xf32>
    %cst_8 = arith.constant 0.000000e+00 : f32
    %25 = vector.broadcast %cst_8 : f32 to vector<16x128xf32>
    %26 = arith.subf %25, %10 : vector<16x128xf32>
    %cst_9 = arith.constant 0.000000e+00 : f32
    %27 = vector.broadcast %cst_9 : f32 to vector<16x128xf32>
    %28 = arith.maximumf %26, %27 : vector<16x128xf32>
    %29 = arith.addf %24, %28 : vector<16x128xf32>
    %30 = arith.mulf %16, %29 : vector<16x128xf32>
    %31 = arith.addf %19, %30 : vector<16x128xf32>
    %32 = tpu.iota {dimensions = array<i32: 0>} : vector<16x128xi32>
    %33 = arith.addi %5, %8 : i32
    %34 = vector.broadcast %33 : i32 to vector<16x128xi32>
    %35 = arith.addi %34, %32 : vector<16x128xi32>
    %c16_i32_10 = arith.constant 16 : i32
    %36 = vector.broadcast %c16_i32_10 : i32 to vector<16x128xi32>
    %37 = arith.cmpi slt, %35, %36 : vector<16x128xi32>
    %cst_11 = arith.constant 0.000000e+00 : f32
    %38 = vector.broadcast %cst_11 : f32 to vector<16x128xf32>
    %39 = arith.select %37, %31, %38 : vector<16x128xi1>, vector<16x128xf32>
    %40 = vector.shape_cast %39 : vector<16x128xf32> to vector<2x8x128xf32>
    %cst_12 = arith.constant dense<0.000000e+00> : vector<8x128xf32>
    %41 = vector.multi_reduction <add>, %40, %cst_12 [0] : vector<2x8x128xf32> to vector<8x128xf32>
    %42 = arith.addf %6, %41 : vector<8x128xf32>
    %c1_i32_13 = arith.constant 1 : i32
    %c0_14 = arith.constant 0 : index
    %c0_15 = arith.constant 0 : index
    %c0_16 = arith.constant 0 : index
    %43 = vector.load %arg4[%c0_14, %c0_15, %c0_16] : memref<1x8x128xf32, #tpu.memory_space<vmem>>, vector<1x8x128xf32>
    %44 = vector.shape_cast %43 : vector<1x8x128xf32> to vector<8x128xf32>
    %45 = arith.addf %44, %42 : vector<8x128xf32>
    %c0_17 = arith.constant 0 : index
    %c0_18 = arith.constant 0 : index
    %c0_19 = arith.constant 0 : index
    %46 = vector.load %arg4[%c0_17, %c0_18, %c0_19] : memref<1x8x128xf32, #tpu.memory_space<vmem>>, vector<1x8x128xf32>
    %47 = vector.shape_cast %46 : vector<1x8x128xf32> to vector<8x128xf32>
    %48 = vector.shape_cast %45 : vector<8x128xf32> to vector<1x8x128xf32>
    tpu.vector_store %arg4[%c0_17, %c0_18, %c0_19], %48 {strides = array<i32>} : memref<1x8x128xf32, #tpu.memory_space<vmem>>, vector<1x8x128xf32>,
    return
  }
  func.func @transform_0(%arg0: i32, %arg1: i32) -> (i32, i32) {
    %c1_i32 = arith.constant 1 : i32
    %0 = arith.muli %arg0, %c1_i32 : i32
    %1 = arith.addi %0, %arg1 : i32
    %c0_i32 = arith.constant 0 : i32
    %c0_i32_0 = arith.constant 0 : i32
    return %1, %c0_i32 : i32, i32
  }
  func.func @transform_1(%arg0: i32, %arg1: i32) -> (i32, i32) {
    %c1_i32 = arith.constant 1 : i32
    %0 = arith.muli %arg0, %c1_i32 : i32
    %1 = arith.addi %0, %arg1 : i32
    %c0_i32 = arith.constant 0 : i32
    %c0_i32_0 = arith.constant 0 : i32
    return %1, %c0_i32 : i32, i32
  }
  func.func @transform_2(%arg0: i32, %arg1: i32) -> (i32, i32, i32) {
    %c0_i32 = arith.constant 0 : i32
    %c0_i32_0 = arith.constant 0 : i32
    %c0_i32_1 = arith.constant 0 : i32
    return %arg0, %c0_i32, %c0_i32_0 : i32, i32, i32
  }
}

</mosaic_0001>

<bundles_post_ra>
// kernel: tpu_custom_call.1
= control target key start
LH: loop header
LB: loop body
LE: loop exit
PB: predicated region body
PF: predicated region fallthrough
CT: control target
= control target key end

     0   :  { %7 = vsyncpa [#allocation3], 0  ;;  %s266_s0 = inlined_call_operand.hbm [shape: f32[16,128], index: 0, kind: input, shape index: {}]   ;;  %s267_s1 = inlined_call_operand.hbm [shape: f32[16,128], index: 1, kind: input, shape index: {}]   ;;  %s268_s2 = inlined_call_operand.hbm [shape: f32[1,8,128], index: 2, kind: output, shape index: {}]  }
   0x1   :  { %8 = vsyncpa [#allocation6], 0 }
   0x2   :  { %9 = vsyncpa [#allocation4], 0  ;;  %s18_s11 = sshll.u32 %s266_s0, 4  ;;  %s237_s12 = smov [#allocation2]   ;;  %s19_s11 = int_to_ptr.hbm [resolvable:$true] %s18_s11 }
   0x3   :  { %s20_s13 = sshll.u32 %s237_s12, 4  ;;  %s35_s16 = sshll.u32 %s267_s1, 4  ;;  %s21_s13 = int_to_ptr.vmem [resolvable:$true] %s20_s13  ;;  %s36_s16 = int_to_ptr.hbm [resolvable:$true] %s35_s16 }
   0x4   :  { %s238_s17 = smov 128   ;;  %s239_s18 = smov 8  }
   0x5   :  { %26 = dma.hbm_to_vmem [thread:$0]  %s19_s11, 256, %s21_s13, [#allocation3], %s238_s17, %s238_s17, %s239_s18  }
   0x6   :  { %s240_s19 = smov [#allocation5]  }
   0x7   :  { %s37_s20 = sshll.u32 %s240_s19, 4  ;;  %s38_s20 = int_to_ptr.vmem [resolvable:$true] %s37_s20 }
   0x8   :  { %43 = dma.hbm_to_vmem [thread:$0]  %s36_s16, 256, %s38_s20, [#allocation6], %s238_s17, %s238_s17, %s239_s18  }
   0x9   :  { %231 = dma.done.wait [#allocation3], 256  }
   0xa   :  { %232 = vsyncadd [#allocation3], 4294967040 }
   0xb   :  { %233 = dma.done.wait [#allocation6], 256  }
   0xc   :  { %234 = vsyncadd [#allocation6], 4294967040  ;;  %v63_v0 = vld [vmem:[#allocation2] sm:$0xff]  ;;  %v64_v1 = vld [vmem:[#allocation2 + $0x8] sm:$0xff]  ;;  %s241_s0 = smov [#allocation7]   ;;  %s134_s23 = sshll.u32 %s268_s2, 4  ;;  %s135_s23 = int_to_ptr.hbm [resolvable:$true] %s134_s23 }
   0xd   :  { %v75_v2 = vand.u32 2147483647, %v63_v0  ;;  %v76_v3 = vand.u32 2147483647, %v64_v1  ;;  %v65_v14 = vld [vmem:[#allocation5] sm:$0xff]  ;;  %v66_v16 = vld [vmem:[#allocation5 + $0x8] sm:$0xff] }
   0xe   :  { %v101_v19 = vsub.f32 0.0, %v63_v0  ;;  %v102_v21 = vsub.f32 0.0, %v64_v1  ;;  %v67_v22 = vmul.f32 1.13, %v65_v14  ;;  %v68_v23 = vmul.f32 1.13, %v66_v16 }
   0xf   :  { %v77_v4 = vsub.f32 0.0, %v75_v2  ;;  %v78_v5 = vsub.f32 0.0, %v76_v3  ;;  %v71_v26 = vsub.f32 1.0, %v65_v14  ;;  %v72_v30 = vsub.f32 1.0, %v66_v16  ;;  %s132_s1 = sshll.u32 %s241_s0, 4  ;;  %s133_s1 = int_to_ptr.vmem [resolvable:$true] %s132_s1 }
  0x10   :  { %v103_v28 = vmax.f32 %v101_v19, 0.0  ;;  %v104_v32 = vmax.f32 %v102_v21, 0.0  ;;  %v69_v33 = vadd.f32 1.0, %v67_v22  ;;  %v70_v35 = vadd.f32 1.0, %v68_v23 }
  0x11   :  { %v79_v6 = vmul.f32 1.442695, %v77_v4  ;;  %v81_v7 = vmul.f32 1.442695, %v78_v5  ;;  %v73_v37 = vmul.f32 %v71_v26, %v63_v0  ;;  %v74_v40 = vmul.f32 %v72_v30, %v64_v1 }
  0x13   :  { %151 = vpow2.f32 %v79_v6 }
  0x14   :  { %153 = vpow2.f32 %v81_v7 }
  0x19   :  { %v152_v8 = vpop.eup %151 }
  0x1a   :  { %v154_v9 = vpop.eup %153  ;;  %v83_v10 = vadd.f32 1.0, %v152_v8  ;;  %v86_v11 = vmul.f32 -0.5, %v152_v8  ;;  %v89_v17 = vand.u32 2147483647, %v152_v8 }
  0x1b   :  { %v92_v12 = vadd.f32 1.0, %v154_v9  ;;  %v95_v13 = vmul.f32 -0.5, %v154_v9  ;;  %v98_v20 = vand.u32 2147483647, %v154_v9 }
  0x1c   :  { %155 = vlog2.f32 %v83_v10  ;;  %v87_v15 = vadd.f32 1.0, %v86_v11  ;;  %vm90_vm0 = vcmp.lt.f32.partialorder %v89_v17, 0.0004427343 }
  0x1d   :  { %157 = vlog2.f32 %v92_v12  ;;  %v96_v18 = vadd.f32 1.0, %v95_v13  ;;  %vm99_vm1 = vcmp.lt.f32.partialorder %v98_v20, 0.0004427343 }
  0x1e   :  { %v88_v24 = vmul.f32 %v152_v8, %v87_v15 }
  0x1f   :  { %v97_v27 = vmul.f32 %v154_v9, %v96_v18 }
  0x22   :  { %v156_v25 = vpop.eup %155 }
  0x23   :  { %v158_v29 = vpop.eup %157  ;;  %v85_v31 = vmul.f32 0.6931472, %v156_v25 }
  0x24   :  { %v94_v34 = vmul.f32 0.6931472, %v158_v29 }
  0x25   :  { %v91_v36 = vsel %vm90_vm0, %v88_v24, %v85_v31 }
  0x26   :  { %v100_v38 = vsel %vm99_vm1, %v97_v27, %v94_v34  ;;  %v105_v39 = vadd.f32 %v103_v28, %v91_v36 }
  0x27   :  { %v106_v41 = vadd.f32 %v104_v32, %v100_v38 }
  0x28   :  { %v107_v42 = vmul.f32 %v105_v39, %v69_v33 }
  0x29   :  { %v108_v43 = vmul.f32 %v106_v41, %v70_v35 }
  0x2a   :  { %v109_v44 = vadd.f32 %v107_v42, %v73_v37 }
  0x2b   :  { %v110_v45 = vadd.f32 %v108_v43, %v74_v40 }
  0x2d   :  { %v122_v46 = vadd.f32 %v110_v45, %v109_v44 }
  0x2f   :  { %126 = vst [vmem:[#allocation7] sm:$0xff] %v122_v46 }
  0x30   :  { %137 = dma.vmem_to_hbm [thread:$0]  %s133_s1, 128, %s135_s23, [#allocation4]  }
  0x31   :  { %235 = dma.done.wait [#allocation4], 128  }
  0x32   :  { %236 = vsyncadd [#allocation4], 4294967168 }
  0x33   :  { %142 = vsyncpa [#allocation3], 1 }
  0x34   :  { %143 = vsyncpa [#allocation6], 1 }
  0x35   :  { %144 = vsyncpa [#allocation4], 1 }

</bundles_post_ra>
